<compile_context>
chip_gen: v5e
topology: v5e:2x2
jax: 0.10.0
libtpu: 0.0.40
codegen_flags: <defaults>
</compile_context>

<pallas_src>
import functools

import jax
import jax.numpy as jnp
from jax.experimental import pallas as pl
from jax.experimental.pallas import tpu as pltpu

_LANE = 128     # vreg lane width: feature dims padded to this for lane-dense ops
_SUBLANE = 8    # f32 sublane width: batch tile granularity


def _round_up(n, m):
    return ((n + m - 1) // m) * m


def _fused_mlp_kernel(*refs, num_layers):
    # refs = (x_ref, w0, b0, w1, b1, ..., w_{L-1}, b_{L-1}, o_ref)
    x_ref = refs[0]
    o_ref = refs[-1]
    wb = refs[1:-1]

    h = x_ref[...]                                           # compute dtype (bf16)
    for layer in range(num_layers):                          # unrolled at trace time
        w_ref, b_ref = wb[2 * layer], wb[2 * layer + 1]
        # MXU matmul in compute dtype with f32 accumulation.
        y = jnp.dot(h, w_ref[...], preferred_element_type=jnp.float32)
        y = y + b_ref[...]                                   # f32 bias add (VPU)
        if layer < num_layers - 1:
            y = jnp.maximum(y, 0.0)                          # f32 ReLU (VPU)
            h = y.astype(w_ref.dtype)                        # back to compute dtype
        else:
            o_ref[...] = y.astype(o_ref.dtype)               # final layer: no ReLU


def mlp_forward(x, params, *, compute_dtype=jnp.bfloat16, block_b=256):
    """Fused MLP forward as a single pallas_call.

    x: [B, D_in] f32.  params: list of (w:[Fin, Fout], b:[1, Fout]) f32
    (weights transposed vs. PyTorch's nn.Linear layout).
    """
    B, D_in = x.shape
    num_layers = len(params)
    dims = [D_in] + [w.shape[1] for (w, _) in params]

    # ---- Lane-dense padding of every feature dim (zero padding is exact). ----
    pdims = [_round_up(d, _LANE) for d in dims]

    # ---- Batch tiling: pick tile, then pad B so the grid divides evenly. ----
    bb = _round_up(min(block_b, _round_up(B, _SUBLANE)), _SUBLANE)
    Bp = _round_up(B, bb)

    xp = jnp.zeros((Bp, pdims[0]), compute_dtype).at[:B, :D_in].set(
        x.astype(compute_dtype))

    padded = []
    for li, (w, b) in enumerate(params):
        fin, fout = dims[li], dims[li + 1]
        wp = jnp.zeros((pdims[li], pdims[li + 1]), compute_dtype
                       ).at[:fin, :fout].set(w.astype(compute_dtype))
        bp = jnp.zeros((1, pdims[li + 1]), jnp.float32
                       ).at[:, :fout].set(b.astype(jnp.float32))
        padded += [wp, bp]

    grid = (Bp // bb,)

    in_specs = [pl.BlockSpec((bb, pdims[0]), lambda i: (i, 0))]
    for li in range(num_layers):
        # Weights / biases: one full-extent block, constant across the batch
        # grid -> stays VMEM-resident, no per-step re-fetch.
        in_specs.append(pl.BlockSpec((pdims[li], pdims[li + 1]), lambda i: (0, 0)))
        in_specs.append(pl.BlockSpec((1, pdims[li + 1]), lambda i: (0, 0)))

    out_specs = pl.BlockSpec((bb, pdims[-1]), lambda i: (i, 0))
    out_shape = jax.ShapeDtypeStruct((Bp, pdims[-1]), jnp.float32)

    flops = sum(2 * Bp * pdims[i] * pdims[i + 1] for i in range(num_layers))
    bytes_accessed = (
        xp.size * xp.dtype.itemsize
        + sum(p.size * p.dtype.itemsize for p in padded)
        + Bp * pdims[-1] * 4)

    out = pl.pallas_call(
        functools.partial(_fused_mlp_kernel, num_layers=num_layers),
        out_shape=out_shape,
        grid=grid,
        in_specs=in_specs,
        out_specs=out_specs,
        compiler_params=pltpu.CompilerParams(
            dimension_semantics=("parallel",)),
        cost_estimate=pl.CostEstimate(
            flops=flops, transcendentals=0, bytes_accessed=bytes_accessed),
    )(xp, *padded)

    # Slice padded batch rows / feature columns back to the true shape.
    return out[:B, :dims[-1]].astype(x.dtype)


def init_mlp_params(key, d_in, h_sizes, d_out, dtype=jnp.float32):
    """Deterministic init mimicking nn.Linear's uniform(-1/sqrt(fan_in), ...)."""
    dims = [d_in] + list(h_sizes) + [d_out]
    params = []
    for i in range(len(dims) - 1):
        fan_in, fan_out = dims[i], dims[i + 1]
        key, kw, kb = jax.random.split(key, 3)
        bound = 1.0 / jnp.sqrt(jnp.asarray(fan_in, jnp.float32))
        w = jax.random.uniform(kw, (fan_in, fan_out), dtype, -bound, bound)
        b = jax.random.uniform(kb, (1, fan_out), dtype, -bound, bound)
        params.append((w, b))
    return params


def _reference_forward(x, params, compute_dtype):
    """Pure-JAX reference using the same cast recipe as the kernel."""
    h = x
    for i, (w, b) in enumerate(params):
        y = jnp.dot(h.astype(compute_dtype), w.astype(compute_dtype),
                    preferred_element_type=jnp.float32) + b
        h = jnp.maximum(y, 0.0) if i < len(params) - 1 else y
    return h


if __name__ == "__main__":
    key = jax.random.PRNGKey(0)
    B, D_in, H_sizes, D_out = 8, 32, [64, 64], 16

    kx, kp = jax.random.split(key)
    x = jax.random.normal(kx, (B, D_in), jnp.float32)
    params = init_mlp_params(kp, D_in, H_sizes, D_out)

    out = jax.jit(mlp_forward)(x, params)
    out = jax.block_until_ready(out)
    assert out.shape == (B, D_out)

    # Reference 1: identical bf16-input / f32-accumulate recipe (tight check).
    ref_bf16 = _reference_forward(x, params, jnp.bfloat16)
    # Reference 2: original f32 nn.Module semantics (loose check for bf16 MXU).
    ref_f32 = _reference_forward(x, params, jnp.float32)

    assert jnp.allclose(out, ref_bf16, atol=1e-3, rtol=1e-3)
    assert jnp.allclose(out, ref_f32, atol=5e-2, rtol=5e-2)

    print("KERNEL_OK")
</pallas_src>

<mosaic_0001>
module attributes {stable_mosaic.version = 11 : i64} {
  func.func @_fused_mlp_kernel(%arg0: i32, %arg1: memref<8x128xbf16, #tpu.memory_space<vmem>>, %arg2: memref<128x128xbf16, #tpu.memory_space<vmem>>, %arg3: memref<1x128xf32, #tpu.memory_space<vmem>>, %arg4: memref<128x128xbf16, #tpu.memory_space<vmem>>, %arg5: memref<1x128xf32, #tpu.memory_space<vmem>>, %arg6: memref<128x128xbf16, #tpu.memory_space<vmem>>, %arg7: memref<1x128xf32, #tpu.memory_space<vmem>>, %arg8: memref<8x128xf32, #tpu.memory_space<vmem>>) attributes {dimension_semantics = [#tpu.dimension_semantics<parallel>], iteration_bounds = array<i64: 1>, scalar_prefetch = 0 : i64, scratch_operands = 0 : i64, tpu.core_type = #tpu.core_type<tc>, window_params = [{transform_indices = @transform_0, window_bounds = array<i64: 8, 128>}, {pipeline_mode = #tpu.pipeline_mode<synchronous>, transform_indices = @transform_1, window_bounds = array<i64: 128, 128>}, {pipeline_mode = #tpu.pipeline_mode<synchronous>, transform_indices = @transform_2, window_bounds = array<i64: 1, 128>}, {pipeline_mode = #tpu.pipeline_mode<synchronous>, transform_indices = @transform_3, window_bounds = array<i64: 128, 128>}, {pipeline_mode = #tpu.pipeline_mode<synchronous>, transform_indices = @transform_4, window_bounds = array<i64: 1, 128>}, {pipeline_mode = #tpu.pipeline_mode<synchronous>, transform_indices = @transform_5, window_bounds = array<i64: 128, 128>}, {pipeline_mode = #tpu.pipeline_mode<synchronous>, transform_indices = @transform_6, window_bounds = array<i64: 1, 128>}, {transform_indices = @transform_7, window_bounds = array<i64: 8, 128>}]} {
    %c0 = arith.constant 0 : index
    %c0_0 = arith.constant 0 : index
    %0 = vector.load %arg1[%c0, %c0_0] : memref<8x128xbf16, #tpu.memory_space<vmem>>, vector<8x128xbf16>
    %c0_1 = arith.constant 0 : index
    %c0_2 = arith.constant 0 : index
    %1 = vector.load %arg2[%c0_1, %c0_2] : memref<128x128xbf16, #tpu.memory_space<vmem>>, vector<128x128xbf16>
    %cst = arith.constant dense<0.000000e+00> : vector<8x128xf32>
    %2 = tpu.matmul %0, %1, %cst {dimension_numbers = #tpu.dot_dimension_numbers<[1], [0], [0], [1], [0, 0, 1, 1], [], []>} : vector<8x128xbf16>, vector<128x128xbf16>, vector<8x128xf32> -> vector<8x128xf32>
    %c0_3 = arith.constant 0 : index
    %c0_4 = arith.constant 0 : index
    %3 = vector.load %arg3[%c0_3, %c0_4] : memref<1x128xf32, #tpu.memory_space<vmem>>, vector<1x128xf32>
    %4 = vector.broadcast %3 : vector<1x128xf32> to vector<8x128xf32>
    %5 = arith.addf %2, %4 : vector<8x128xf32>
    %cst_5 = arith.constant 0.000000e+00 : f32
    %6 = vector.broadcast %cst_5 : f32 to vector<8x128xf32>
    %7 = arith.maximumf %5, %6 : vector<8x128xf32>
    %8 = arith.truncf %7 : vector<8x128xf32> to vector<8x128xbf16>
    %c0_6 = arith.constant 0 : index
    %c0_7 = arith.constant 0 : index
    %9 = vector.load %arg4[%c0_6, %c0_7] : memref<128x128xbf16, #tpu.memory_space<vmem>>, vector<128x128xbf16>
    %cst_8 = arith.constant dense<0.000000e+00> : vector<8x128xf32>
    %10 = tpu.matmul %8, %9, %cst_8 {dimension_numbers = #tpu.dot_dimension_numbers<[1], [0], [0], [1], [0, 0, 1, 1], [], []>} : vector<8x128xbf16>, vector<128x128xbf16>, vector<8x128xf32> -> vector<8x128xf32>
    %c0_9 = arith.constant 0 : index
    %c0_10 = arith.constant 0 : index
    %11 = vector.load %arg5[%c0_9, %c0_10] : memref<1x128xf32, #tpu.memory_space<vmem>>, vector<1x128xf32>
    %12 = vector.broadcast %11 : vector<1x128xf32> to vector<8x128xf32>
    %13 = arith.addf %10, %12 : vector<8x128xf32>
    %cst_11 = arith.constant 0.000000e+00 : f32
    %14 = vector.broadcast %cst_11 : f32 to vector<8x128xf32>
    %15 = arith.maximumf %13, %14 : vector<8x128xf32>
    %16 = arith.truncf %15 : vector<8x128xf32> to vector<8x128xbf16>
    %c0_12 = arith.constant 0 : index
    %c0_13 = arith.constant 0 : index
    %17 = vector.load %arg6[%c0_12, %c0_13] : memref<128x128xbf16, #tpu.memory_space<vmem>>, vector<128x128xbf16>
    %cst_14 = arith.constant dense<0.000000e+00> : vector<8x128xf32>
    %18 = tpu.matmul %16, %17, %cst_14 {dimension_numbers = #tpu.dot_dimension_numbers<[1], [0], [0], [1], [0, 0, 1, 1], [], []>} : vector<8x128xbf16>, vector<128x128xbf16>, vector<8x128xf32> -> vector<8x128xf32>
    %c0_15 = arith.constant 0 : index
    %c0_16 = arith.constant 0 : index
    %19 = vector.load %arg7[%c0_15, %c0_16] : memref<1x128xf32, #tpu.memory_space<vmem>>, vector<1x128xf32>
    %20 = vector.broadcast %19 : vector<1x128xf32> to vector<8x128xf32>
    %21 = arith.addf %18, %20 : vector<8x128xf32>
    %c0_17 = arith.constant 0 : index
    %c0_18 = arith.constant 0 : index
    %22 = vector.load %arg8[%c0_17, %c0_18] : memref<8x128xf32, #tpu.memory_space<vmem>>, vector<8x128xf32>
    tpu.vector_store %arg8[%c0_17, %c0_18], %21 {strides = array<i32>} : memref<8x128xf32, #tpu.memory_space<vmem>>, vector<8x128xf32>,
    return
  }
  func.func @transform_0(%arg0: i32) -> (i32, i32) {
    %c0_i32 = arith.constant 0 : i32
    %c0_i32_0 = arith.constant 0 : i32
    return %arg0, %c0_i32 : i32, i32
  }
  func.func @transform_1(%arg0: i32) -> (i32, i32) {
    %c0_i32 = arith.constant 0 : i32
    %c0_i32_0 = arith.constant 0 : i32
    %c0_i32_1 = arith.constant 0 : i32
    return %c0_i32, %c0_i32_0 : i32, i32
  }
  func.func @transform_2(%arg0: i32) -> (i32, i32) {
    %c0_i32 = arith.constant 0 : i32
    %c0_i32_0 = arith.constant 0 : i32
    %c0_i32_1 = arith.constant 0 : i32
    return %c0_i32, %c0_i32_0 : i32, i32
  }
  func.func @transform_3(%arg0: i32) -> (i32, i32) {
    %c0_i32 = arith.constant 0 : i32
    %c0_i32_0 = arith.constant 0 : i32
    %c0_i32_1 = arith.constant 0 : i32
    return %c0_i32, %c0_i32_0 : i32, i32
  }
  func.func @transform_4(%arg0: i32) -> (i32, i32) {
    %c0_i32 = arith.constant 0 : i32
    %c0_i32_0 = arith.constant 0 : i32
    %c0_i32_1 = arith.constant 0 : i32
    return %c0_i32, %c0_i32_0 : i32, i32
  }
  func.func @transform_5(%arg0: i32) -> (i32, i32) {
    %c0_i32 = arith.constant 0 : i32
    %c0_i32_0 = arith.constant 0 : i32
    %c0_i32_1 = arith.constant 0 : i32
    return %c0_i32, %c0_i32_0 : i32, i32
  }
  func.func @transform_6(%arg0: i32) -> (i32, i32) {
    %c0_i32 = arith.constant 0 : i32
    %c0_i32_0 = arith.constant 0 : i32
    %c0_i32_1 = arith.constant 0 : i32
    return %c0_i32, %c0_i32_0 : i32, i32
  }
  func.func @transform_7(%arg0: i32) -> (i32, i32) {
    %c0_i32 = arith.constant 0 : i32
    %c0_i32_0 = arith.constant 0 : i32
    return %arg0, %c0_i32 : i32, i32
  }
}

</mosaic_0001>

<bundles_post_ra>
// kernel: mlp_forward.1
= control target key start
LH: loop header
LB: loop body
LE: loop exit
PB: predicated region body
PF: predicated region fallthrough
CT: control target
= control target key end

     0   :  { %s570_s0 = inlined_call_operand.vmem [shape: bf16[8,128], index: 0, kind: input, shape index: {}]   ;;  %s571_s1 = inlined_call_operand.vmem [shape: bf16[128,128], index: 1, kind: input, shape index: {}]   ;;  %s572_s2 = inlined_call_operand.vmem [shape: f32[1,128], index: 2, kind: input, shape index: {}]   ;;  %s573_s3 = inlined_call_operand.vmem [shape: bf16[128,128], index: 3, kind: input, shape index: {}]   ;;  %s574_s4 = inlined_call_operand.vmem [shape: f32[1,128], index: 4, kind: input, shape index: {}]   ;;  %s575_s5 = inlined_call_operand.vmem [shape: bf16[128,128], index: 5, kind: input, shape index: {}]   ;;  %s576_s6 = inlined_call_operand.vmem [shape: f32[1,128], index: 6, kind: input, shape index: {}]   ;;  %s577_s7 = inlined_call_operand.hbm [shape: f32[8,128], index: 7, kind: output, shape index: {}]  }
   0x1   :  { %v395_v0 = vld [vmem:[%s571_s1 + $0x38] sm:$0xff]  ;;  %v394_v1 = vld [vmem:[%s571_s1 + $0x30] sm:$0xff]  ;;  %v393_v4 = vld [vmem:[%s571_s1 + $0x28] sm:$0xff] }
   0x2   :  { %96 = vmatpush.bf16.msra.mxu0 %v395_v0  ;;  %v403_v2 = vld [vmem:[%s573_s3 + $0x38] sm:$0xff]  ;;  %v402_v3 = vld [vmem:[%s573_s3 + $0x30] sm:$0xff] }
   0x3   :  { %179 = vmatpush.bf16.msra.mxu1 %v403_v2 }
   0x6   :  { %97 = vmatpush.bf16.msra.mxu0 %v394_v1 }
   0x7   :  { %12 = vsyncpa [#allocation3], 0  ;;  %180 = vmatpush.bf16.msra.mxu1 %v402_v3  ;;  %v401_v5 = vld [vmem:[%s573_s3 + $0x28] sm:$0xff]  ;;  %v392_v6 = vld [vmem:[%s571_s1 + $0x20] sm:$0xff]  ;;  %s442_s30 = smov [#allocation2]  }
   0x8   :  { %v400_v7 = vld [vmem:[%s573_s3 + $0x20] sm:$0xff]  ;;  %v391_v8 = vld [vmem:[%s571_s1 + $0x18] sm:$0xff]  ;;  %v390_v10 = vld [vmem:[%s571_s1 + $0x10] sm:$0xff]  ;;  %s281_s8 = sshll.u32 %s442_s30, 4  ;;  %s282_s8 = int_to_ptr.vmem [resolvable:$true] %s281_s8 }
   0x9   :  { %v399_v9 = vld [vmem:[%s573_s3 + $0x18] sm:$0xff]  ;;  %v398_v11 = vld [vmem:[%s573_s3 + $0x10] sm:$0xff]  ;;  %v389_v12 = vld [vmem:[%s571_s1 + $0x8] sm:$0xff] }
   0xa   :  { %98 = vmatpush.bf16.msra.mxu0 %v393_v4  ;;  %v388_v13 = vld [vmem:[%s571_s1] sm:$0xff]  ;;  %v397_v15 = vld [vmem:[%s573_s3 + $0x8] sm:$0xff]  ;;  %v411_v17 = vld [vmem:[%s575_s5 + $0x38] sm:$0xff] }
   0xb   :  { %181 = vmatpush.bf16.msra.mxu1 %v401_v5  ;;  %v27_v14 = vld [vmem:[%s570_s0] sm:$0xf]  ;;  %262 = vmatpush.bf16.msra.mxu2 %v411_v17  ;;  %v410_v18 = vld [vmem:[%s575_s5 + $0x30] sm:$0xff]  ;;  %v409_v19 = vld [vmem:[%s575_s5 + $0x28] sm:$0xff] }
   0xc   :  { %v396_v16 = vld [vmem:[%s573_s3] sm:$0xff]  ;;  %v407_v21 = vld [vmem:[%s575_s5 + $0x18] sm:$0xff]  ;;  %v406_v22 = vld [vmem:[%s575_s5 + $0x10] sm:$0xff] }
   0xd   :  { %v408_v20 = vld [vmem:[%s575_s5 + $0x20] sm:$0xff]  ;;  %v405_v29 = vld [vmem:[%s575_s5 + $0x8] sm:$0xff] }
   0xe   :  { %99 = vmatpush.bf16.msra.mxu0 %v392_v6  ;;  %v413_v23 = vld [vmem:[%s572_s2] ss:$0 sm:$0xff] }
   0xf   :  { %182 = vmatpush.bf16.msra.mxu1 %v400_v7  ;;  %263 = vmatpush.bf16.msra.mxu2 %v410_v18  ;;  %v404_v30 = vld [vmem:[%s575_s5] sm:$0xff]  ;;  %s283_s5 = sshll.u32 %s577_s7, 4  ;;  %s284_s5 = int_to_ptr.hbm [resolvable:$true] %s283_s5 }
  0x10   :  { %v414_v31 = vld [vmem:[%s574_s4] ss:$0 sm:$0xff] }
  0x11   :  { %v415_v37 = vld [vmem:[%s576_s6] ss:$0 sm:$0xff] }
  0x12   :  { %100 = vmatpush.bf16.msra.mxu0 %v391_v8 }
  0x13   :  { %183 = vmatpush.bf16.msra.mxu1 %v399_v9  ;;  %264 = vmatpush.bf16.msra.mxu2 %v409_v19 }
  0x16   :  { %101 = vmatpush.bf16.msra.mxu0 %v390_v10 }
  0x17   :  { %184 = vmatpush.bf16.msra.mxu1 %v398_v11  ;;  %265 = vmatpush.bf16.msra.mxu2 %v408_v20 }
  0x1a   :  { %102 = vmatpush.bf16.msra.mxu0 %v389_v12 }
  0x1b   :  { %185 = vmatpush.bf16.msra.mxu1 %v397_v15  ;;  %266 = vmatpush.bf16.msra.mxu2 %v407_v21 }
  0x1e   :  { %103 = vmatpush.bf16.msra.mxu0 %v388_v13 }
  0x1f   :  { %186 = vmatpush.bf16.msra.mxu1 %v396_v16  ;;  %267 = vmatpush.bf16.msra.mxu2 %v406_v22 }
  0x21   :  { %104 = vmatmul.bf16.vlgmr.msra.gmra.mxu0 %v27_v14 }
  0x23   :  { %268 = vmatpush.bf16.msra.mxu2 %v405_v29 }
  0x27   :  { %269 = vmatpush.bf16.msra.mxu2 %v404_v30 }
  0x9e   :  { %v105_v24 = vpop.f32.mrf.mxu0 }
  0x9f   :  { %v106_v25 = vadd.f32 %v413_v23, %v105_v24 }
  0xa1   :  { %v109_v26 = vmax.f32 %v106_v25, 0.0 }
  0xa3   :  { %v110_v27 = vpack.c.bf16 %v109_v26, %v109_v26 }
  0xa5   :  { %187 = vmatmul.bf16.vlgmr.msra.gmra.mxu1 %v110_v27 }
  0xa6   :  { %v107_v28 = vpop.f32.mrf.mxu0 }
 0x122   :  { %v188_v32 = vpop.f32.mrf.mxu1 }
 0x123   :  { %v189_v33 = vadd.f32 %v414_v31, %v188_v32 }
 0x125   :  { %v192_v34 = vmax.f32 %v189_v33, 0.0 }
 0x127   :  { %v193_v35 = vpack.c.bf16 %v192_v34, %v192_v34 }
 0x129   :  { %270 = vmatmul.bf16.vlgmr.msra.gmra.mxu2 %v193_v35 }
 0x12a   :  { %v190_v36 = vpop.f32.mrf.mxu1 }
 0x1ac   :  { %v271_v38 = vpop.f32.mrf.mxu2 }
 0x1ad   :  { %v272_v39 = vadd.f32 %v415_v37, %v271_v38 }
 0x1af   :  { %275 = vst [vmem:[#allocation2] sm:$0xff] %v272_v39 }
 0x1b0   :  { %286 = dma.vmem_to_hbm [thread:$0]  %s282_s8, 128, %s284_s5, [#allocation3]  }
 0x1b4   :  { %v273_v40 = vpop.f32.mrf.mxu2 }
 0x1b5   :  { %440 = dma.done.wait [#allocation3], 128  }
 0x1b6   :  { %441 = vsyncadd [#allocation3], 4294967168 }
 0x1b7   :  { %291 = vsyncpa [#allocation3], 1 }

</bundles_post_ra>
